<compile_context>
chip_gen: v7x
topology: tpu7x:2x2x1
jax: 0.10.0
libtpu: 0.0.40
codegen_flags: <defaults>
</compile_context>

<pallas_src>
import functools

import jax
import jax.numpy as jnp
from jax import lax
from jax.experimental import pallas as pl
from jax.experimental.pallas import tpu as pltpu


# --------------------------------------------------------------------------------------
# Kernel
# --------------------------------------------------------------------------------------
def _linear_kernel(*refs, has_bias: bool, use_scratch: bool, single_k: bool,
                   k_rem: int, precision):
    it = iter(refs)
    x_ref = next(it)
    w_ref = next(it)
    b_ref = next(it) if has_bias else None
    o_ref = next(it)
    acc_ref = next(it) if use_scratch else None

    x_val = x_ref[...]
    w_val = w_ref[...]

    # Mask the K tail of the last reduction block (both operands, so OOB NaN/Inf
    # garbage can never reach the accumulator).  Statically skipped when K divides.
    if (not single_k) and k_rem:
        k = pl.program_id(2)
        lim = jnp.where(k == pl.num_programs(2) - 1, k_rem, x_val.shape[1])
        x_val = jnp.where(lax.broadcasted_iota(jnp.int32, x_val.shape, 1) < lim, x_val, 0)
        w_val = jnp.where(lax.broadcasted_iota(jnp.int32, w_val.shape, 1) < lim, w_val, 0)

    # x:(tb,tk) · w:(tn,tk) contracted on the Nin axis of both -> (tb, tn).
    part = lax.dot_general(
        x_val, w_val,
        dimension_numbers=(((1,), (1,)), ((), ())),
        preferred_element_type=jnp.float32,
        precision=precision,
    )

    if single_k:
        if has_bias:
            part = part + b_ref[...].astype(jnp.float32)   # (1, tn) broadcasts over rows
        o_ref[...] = part.astype(o_ref.dtype)
        return

    k = pl.program_id(2)
    acc = acc_ref if use_scratch else o_ref   # f32 output doubles as the accumulator

    @pl.when(k == 0)
    def _():
        acc[...] = part                       # first K step: overwrite (no zero-init pass)

    @pl.when(k > 0)
    def _():
        acc[...] += part

    if has_bias or use_scratch:
        @pl.when(k == pl.num_programs(2) - 1)
        def _():
            out = acc[...]
            if has_bias:
                out = out + b_ref[...].astype(jnp.float32)
            o_ref[...] = out.astype(o_ref.dtype)


# --------------------------------------------------------------------------------------
# Tile / VMEM planning helpers
# --------------------------------------------------------------------------------------
def _vmem_budget_bytes() -> int:
    """~75% of physical VMEM: ~48 MiB on v7x (64 MiB), ~96 MiB on v5e/v6e (128 MiB)."""
    phys = 128 << 20
    try:
        info = pltpu.get_tpu_info()
        phys = int(getattr(info, "vmem_capacity_bytes", phys)) or phys
    except Exception:
        pass
    return max((phys // 4) * 3, 16 << 20)


def _vmem_needed(tb: int, tn: int, tk: int, xb: int, wb: int, ob: int, bias_b: int) -> int:
    """Double-buffered working set (conservatively includes the f32 acc scratch)."""
    n = 2 * tb * tk * xb + 2 * tn * tk * wb + 2 * tb * tn * ob + tb * tn * 4
    if bias_b:
        n += 2 * 8 * tn * bias_b
    return n


def _pick_tile(dim: int, pref: int, align: int) -> int:
    """Tile ~<= pref: full dim if it (nearly) fits, else a dividing multiple of `align`
    near pref, else pref itself (partial tail, masked on the output side)."""
    pref = max(align, (pref // align) * align)
    if dim <= pref + pref // 4:          # full-dim block: no tail, fewest grid steps
        return dim
    if dim % pref == 0:
        return pref
    t = pref
    floor = max(align, pref // 2)
    while t >= floor:                    # prefer an evenly-dividing tile close to pref
        if dim % t == 0:
            return t
        t -= align
    return pref


# --------------------------------------------------------------------------------------
# Wrapper
# --------------------------------------------------------------------------------------
def base_linear(x: jax.Array, weight: jax.Array, bias: jax.Array | None = None, *,
                tile_b: int = 512, tile_n: int = 512, tile_k: int | None = None,
                compute_dtype=None, precision=None) -> jax.Array:
    """Pallas equivalent of torch.nn.Linear: y = x @ weight.T + bias.

    x:      (B, Nin)
    weight: (Nout, Nin)   (PyTorch convention; never transposed in the wrapper)
    bias:   (Nout,) or None
    compute_dtype: optional cast for x/weight (e.g. jnp.bfloat16); accumulation is f32
                   and the output keeps x's original dtype.
    tile_k=None -> auto: single K block whenever it fits the VMEM budget.
    """
    B, Nin = x.shape
    Nout, Nin_w = weight.shape
    assert Nin_w == Nin, "weight must be (Nout, Nin)"
    has_bias = bias is not None
    if has_bias:
        assert bias.shape == (Nout,), "bias must be (Nout,)"
    out_dtype = x.dtype

    if compute_dtype is not None:
        x = x.astype(compute_dtype)
        weight = weight.astype(compute_dtype)

    xb = x.dtype.itemsize
    wb = weight.dtype.itemsize
    ob = jnp.dtype(out_dtype).itemsize
    bias_b = bias.dtype.itemsize if has_bias else 0
    sub = max(8, 32 // xb)               # sublane packing: 8 f32 / 16 bf16 / 32 int8-fp8

    budget = _vmem_budget_bytes()

    tb = _pick_tile(B, tile_b, sub)
    tn = _pick_tile(Nout, tile_n, 128)

    # Prefer a single K block (reduction axis vanishes) whenever it fits the budget.
    if tile_k is None:
        if _vmem_needed(tb, tn, Nin, xb, wb, ob, bias_b) <= budget:
            tk = Nin
        else:
            tk = _pick_tile(Nin, 1024, 128)
    else:
        tk = _pick_tile(Nin, tile_k, 128)

    # If the whole problem is one (B,N) block, split N so both v7x TensorCores get work
    # (near-free on single-TC v5e/v6e: the x block index stays constant across j).
    if pl.cdiv(B, tb) == 1 and pl.cdiv(Nout, tn) == 1 and Nout >= 256:
        tn = ((pl.cdiv(Nout, 2) + 127) // 128) * 128

    # Shrink-to-fit the VMEM budget (K first, then N, then B).  Rarely triggers.
    while _vmem_needed(tb, tn, tk, xb, wb, ob, bias_b) > budget:
        if tk > 128:
            tk = max(128, ((tk // 2) // 128) * 128)
        elif tn > 128:
            tn = max(128, ((tn // 2) // 128) * 128)
        elif tb > sub:
            tb = max(sub, ((tb // 2) // sub) * sub)
        else:
            break

    grid_b, grid_n, grid_k = pl.cdiv(B, tb), pl.cdiv(Nout, tn), pl.cdiv(Nin, tk)
    single_k = grid_k == 1
    k_rem = 0 if single_k else (Nin % tk)
    use_scratch = (not single_k) and (jnp.dtype(out_dtype) != jnp.dtype(jnp.float32))

    operands = [x, weight]
    if single_k:
        grid = (grid_b, grid_n)
        in_specs = [
            pl.BlockSpec((tb, tk), lambda i, j: (i, 0)),       # x tile (constant over j)
            pl.BlockSpec((tn, tk), lambda i, j: (j, 0)),       # weight tile, (Nout, Nin)
        ]
        if has_bias:
            in_specs.append(pl.BlockSpec((1, tn), lambda i, j: (0, j)))
        out_spec = pl.BlockSpec((tb, tn), lambda i, j: (i, j))
        dim_sem = ("parallel", "parallel")
    else:
        grid = (grid_b, grid_n, grid_k)
        in_specs = [
            pl.BlockSpec((tb, tk), lambda i, j, k: (i, k)),
            pl.BlockSpec((tn, tk), lambda i, j, k: (j, k)),
        ]
        if has_bias:
            in_specs.append(pl.BlockSpec((1, tn), lambda i, j, k: (0, j)))
        out_spec = pl.BlockSpec((tb, tn), lambda i, j, k: (i, j))
        dim_sem = ("parallel", "parallel", "arbitrary")
    if has_bias:
        operands.append(bias.reshape(1, Nout))

    scratch_shapes = [pltpu.VMEM((tb, tn), jnp.float32)] if use_scratch else []

    needed = _vmem_needed(tb, tn, tk, xb, wb, ob, bias_b)
    vmem_limit = int(min(budget, max(needed + needed // 2 + (2 << 20), 16 << 20)))

    # Advisory cost estimate with real re-read traffic.
    x_reads = 1 if single_k else grid_n          # x block is re-fetched per N tile
    bytes_accessed = (x.size * xb * x_reads
                      + weight.size * wb * grid_b        # weight re-streamed per B tile
                      + B * Nout * ob
                      + (Nout * bias_b * grid_b if has_bias else 0))
    cost = pl.CostEstimate(flops=2 * B * Nin * Nout, transcendentals=0,
                           bytes_accessed=int(bytes_accessed))

    kernel = functools.partial(_linear_kernel, has_bias=has_bias, use_scratch=use_scratch,
                               single_k=single_k, k_rem=k_rem, precision=precision)

    return pl.pallas_call(
        kernel,
        out_shape=jax.ShapeDtypeStruct((B, Nout), out_dtype),
        grid_spec=pltpu.PrefetchScalarGridSpec(
            num_scalar_prefetch=0,
            grid=grid,
            in_specs=in_specs,
            out_specs=out_spec,
            scratch_shapes=scratch_shapes,
        ),
        compiler_params=pltpu.CompilerParams(
            dimension_semantics=dim_sem,
            vmem_limit_bytes=vmem_limit,
        ),
        cost_estimate=cost,
    )(*operands)


# --------------------------------------------------------------------------------------
# Demo / self-test
# --------------------------------------------------------------------------------------
if __name__ == "__main__":
    key = jax.random.PRNGKey(0)

    # --- Small config matching BaseLinear(Nin=32, Nout=16, use_bias=True) ---
    Nin, Nout, B = 32, 16, 8
    kx, kw, kb = jax.random.split(key, 3)
    bound = 1.0 / (Nin ** 0.5)                       # PyTorch-like U(-1/sqrt(Nin), ...)
    weight = jax.random.uniform(kw, (Nout, Nin), jnp.float32, -bound, bound)
    bias = jax.random.uniform(kb, (Nout,), jnp.float32, -bound, bound)
    x = jax.random.normal(kx, (B, Nin), jnp.float32)

    y = jax.block_until_ready(base_linear(x, weight, bias))
    y_ref = x @ weight.T + bias
    assert y.shape == (B, Nout)
    assert jnp.allclose(y, y_ref, atol=1e-5, rtol=1e-5)

    # --- use_bias=False path (no zero-bias array, no extra DMA stream) ---
    y_nb = jax.block_until_ready(base_linear(x, weight, None))
    assert jnp.allclose(y_nb, x @ weight.T, atol=1e-5, rtol=1e-5)

    # --- explicit high-precision path (f32 parity with the PyTorch reference) ---
    y_hp = jax.block_until_ready(base_linear(x, weight, bias,
                                             precision=lax.Precision.HIGHEST))
    y_hp_ref = jnp.dot(x, weight.T, precision=lax.Precision.HIGHEST) + bias
    assert jnp.allclose(y_hp, y_hp_ref, atol=1e-5, rtol=1e-5)

    # --- Larger shape exercising tiled-K accumulation + K-tail masking + partial N ---
    B2, Nin2, Nout2 = 512, 576, 640                  # tile_k=256 -> K grid of 3, tail 64
    k1, k2, k3 = jax.random.split(jax.random.PRNGKey(1), 3)
    bound2 = 1.0 / (Nin2 ** 0.5)
    w2 = jax.random.uniform(k1, (Nout2, Nin2), jnp.float32, -bound2, bound2)
    b2 = jax.random.uniform(k2, (Nout2,), jnp.float32, -bound2, bound2)
    x2 = jax.random.normal(k3, (B2, Nin2), jnp.float32)

    y2 = jax.block_until_ready(base_linear(x2, w2, b2, tile_k=256))
    y2_ref = jnp.dot(x2, w2.T, precision=lax.Precision.HIGHEST) + b2
    assert y2.shape == (B2, Nout2)
    assert jnp.allclose(y2, y2_ref, atol=2e-2, rtol=2e-2)

    # --- bf16 compute path (single-K auto tiling; f32 accumulation; f32 output) ---
    y2_bf16 = jax.block_until_ready(base_linear(x2, w2, b2, compute_dtype=jnp.bfloat16))
    assert y2_bf16.dtype == jnp.float32
    assert jnp.allclose(y2_bf16, y2_ref, atol=1e-1, rtol=5e-2)

    print("KERNEL_OK")
</pallas_src>

<mosaic_0001>
module attributes {stable_mosaic.version = 11 : i64} {
  func.func @_linear_kernel(%arg0: i32, %arg1: i32, %arg2: memref<8x32xf32, #tpu.memory_space<vmem>>, %arg3: memref<16x32xf32, #tpu.memory_space<vmem>>, %arg4: memref<1x16xf32, #tpu.memory_space<vmem>>, %arg5: memref<8x16xf32, #tpu.memory_space<vmem>>) attributes {dimension_semantics = [#tpu.dimension_semantics<parallel>, #tpu.dimension_semantics<parallel>], iteration_bounds = array<i64: 1, 1>, scalar_prefetch = 0 : i64, scratch_operands = 0 : i64, tpu.core_type = #tpu.core_type<tc>, window_params = [{transform_indices = @transform_0, window_bounds = array<i64: 8, 32>}, {transform_indices = @transform_1, window_bounds = array<i64: 16, 32>}, {transform_indices = @transform_2, window_bounds = array<i64: 1, 16>}, {transform_indices = @transform_3, window_bounds = array<i64: 8, 16>}]} {
    %c0 = arith.constant 0 : index
    %c0_0 = arith.constant 0 : index
    %0 = vector.load %arg2[%c0, %c0_0] : memref<8x32xf32, #tpu.memory_space<vmem>>, vector<8x32xf32>
    %c0_1 = arith.constant 0 : index
    %c0_2 = arith.constant 0 : index
    %1 = vector.load %arg3[%c0_1, %c0_2] : memref<16x32xf32, #tpu.memory_space<vmem>>, vector<16x32xf32>
    %cst = arith.constant dense<0.000000e+00> : vector<8x16xf32>
    %2 = tpu.matmul %0, %1, %cst {dimension_numbers = #tpu.dot_dimension_numbers<[1], [1], [0], [0], [0, 0, 1, 0], [], []>} : vector<8x32xf32>, vector<16x32xf32>, vector<8x16xf32> -> vector<8x16xf32>
    %c0_3 = arith.constant 0 : index
    %c0_4 = arith.constant 0 : index
    %3 = vector.load %arg4[%c0_3, %c0_4] : memref<1x16xf32, #tpu.memory_space<vmem>>, vector<1x16xf32>
    %4 = vector.broadcast %3 : vector<1x16xf32> to vector<8x16xf32>
    %5 = arith.addf %2, %4 : vector<8x16xf32>
    %c0_5 = arith.constant 0 : index
    %c0_6 = arith.constant 0 : index
    %6 = vector.load %arg5[%c0_5, %c0_6] : memref<8x16xf32, #tpu.memory_space<vmem>>, vector<8x16xf32>
    tpu.vector_store %arg5[%c0_5, %c0_6], %5 {strides = array<i32>} : memref<8x16xf32, #tpu.memory_space<vmem>>, vector<8x16xf32>,
    return
  }
  func.func @transform_0(%arg0: i32, %arg1: i32) -> (i32, i32) {
    %c0_i32 = arith.constant 0 : i32
    %c0_i32_0 = arith.constant 0 : i32
    return %arg0, %c0_i32 : i32, i32
  }
  func.func @transform_1(%arg0: i32, %arg1: i32) -> (i32, i32) {
    %c0_i32 = arith.constant 0 : i32
    %c0_i32_0 = arith.constant 0 : i32
    return %arg1, %c0_i32 : i32, i32
  }
  func.func @transform_2(%arg0: i32, %arg1: i32) -> (i32, i32) {
    %c0_i32 = arith.constant 0 : i32
    %c0_i32_0 = arith.constant 0 : i32
    return %c0_i32, %arg1 : i32, i32
  }
  func.func @transform_3(%arg0: i32, %arg1: i32) -> (i32, i32) {
    %c0_i32 = arith.constant 0 : i32
    return %arg0, %arg1 : i32, i32
  }
}

</mosaic_0001>

<bundles_post_ra>
// kernel: tpu_custom_call.1
= control target key start
LH: loop header
LB: loop body
LE: loop exit
PB: predicated region body
PF: predicated region fallthrough
CT: control target
= control target key end

     0   :  { %8 = vsyncpa [#allocation3], 0  ;;  %s321_s0 = inlined_call_operand.hbm [shape: f32[8,32], index: 0, kind: input, shape index: {}]   ;;  %s322_s1 = inlined_call_operand.hbm [shape: f32[16,32], index: 1, kind: input, shape index: {}]   ;;  %s323_s2 = inlined_call_operand.vmem [shape: f32[1,16], index: 2, kind: input, shape index: {}]   ;;  %s324_s3 = inlined_call_operand.hbm [shape: f32[8,16], index: 3, kind: output, shape index: {}]  }
   0x1   :  { %9 = vsyncpa [#allocation6], 0 }
   0x2   :  { %10 = vsyncpa [#allocation4], 0  ;;  %s247_s12 = smov [#allocation2]   ;;  %s248_s14 = smov [#allocation5]  }
   0x3   :  { %s17_s13 = sshll.u32 %s247_s12, 4  ;;  %s26_s15 = sshll.u32 %s248_s14, 4  ;;  %s18_s13 = int_to_ptr.vmem [resolvable:$true] %s17_s13  ;;  %s275_s15 = int_to_ptr.vmem [resolvable:$true] %s26_s15 }
   0x4   :  { %s175_s18 = scalar_lea.hbm %s321_s0, 128 }
   0x5   :  { %p176_p0 = scmp.ne.s32.totalorder %s321_s0, %s175_s18  ;;  %p179_p1 = scmp.lt.u32.totalorder %s175_s18, %s321_s0 }
   0x7   :  { %p181_p2 = pnand %p179_p1, %p176_p0 }
   0x9   :  { %184 = shalt.err (!%p181_p2)
}
   0xa   :  { %s185_s23 = scalar_lea.vmem %s18_s13, 128  ;;  %p190_p4 = scmp.lt.s32.totalorder %s18_s13, %s18_s13 }
   0xb   :  { %p186_p3 = scmp.ne.s32.totalorder %s18_s13, %s185_s23  ;;  %p191_p5 = scmp.lt.s32.totalorder %s185_s23, %s185_s23 }
   0xd   :  { %p192_p6 = por %p191_p5, %p190_p4 }
   0xf   :  { %p193_p7 = pnand %p192_p6, %p186_p3 }
  0x11   :  { %196 = shalt.err (!%p193_p7)
}
  0x12   :  { %20 = dma.hbm_to_vmem [thread:$0]  %s321_s0, 128, %s18_s13, [#allocation3]  }
  0x13   :  { %s197_s28 = scalar_lea.hbm %s322_s1, 256 }
  0x14   :  { %p198_p8 = scmp.ne.s32.totalorder %s322_s1, %s197_s28  ;;  %p201_p9 = scmp.lt.u32.totalorder %s197_s28, %s322_s1 }
  0x16   :  { %p203_p10 = pnand %p201_p9, %p198_p8 }
  0x18   :  { %206 = shalt.err (!%p203_p10)
}
  0x19   :  { %s207_s6 = scalar_lea.vmem %s275_s15, 256  ;;  %p212_p12 = scmp.lt.s32.totalorder %s275_s15, %s275_s15 }
  0x1a   :  { %p208_p11 = scmp.ne.s32.totalorder %s275_s15, %s207_s6  ;;  %p213_p13 = scmp.lt.s32.totalorder %s207_s6, %s207_s6 }
  0x1c   :  { %p214_p0 = por %p213_p13, %p212_p12 }
  0x1e   :  { %p215_p1 = pnand %p214_p0, %p208_p11 }
  0x20   :  { %218 = shalt.err (!%p215_p1)
}
  0x21   :  { %s249_s0 = smov 128   ;;  %s250_s7 = smov 8  }
  0x22   :  { %32 = dma.hbm_to_vmem [thread:$0]  %s322_s1, 256, %s275_s15, [#allocation6], %s249_s0, %s249_s0, %s250_s7  }
  0x23   :  { %241 = dma.done.wait [#allocation3], 128  }
  0x24   :  { %242 = vsyncadd [#allocation3], 4294967168 }
  0x25   :  { %243 = dma.done.wait [#allocation6], 256  }
  0x26   :  { %244 = vsyncadd [#allocation6], 4294967040  ;;  %v251_v0 = vmov 0.0|0.0   ;;  %vm252_vm0 = vmmov 0   ;;  %v253_v1 = vmov 0.0   ;;  %vm51_vm1 = vcmask 261120  }
  0x27   :  { %163 = vmatprep.subr.bf16.mxu0 %v251_v0  ;;  %160 = vmatprep.mubr.msk.f32.mxu0 %vm252_vm0, %v253_v1  ;;  %v42_v2 = vld [vmem:[#allocation5] sm:$0xff]  ;;  %v43_v3 = vld [vmem:[#allocation5 + $0x8] sm:$0xff]  ;;  %vm165_vm2 = vmpackc.low %vm51_vm1, %vm51_vm1  ;;  %s254_s1 = smov [#allocation7]   ;;  %vm131_vm3 = vcmask 130048  }
  0x28   :  { %v164_v4 = vpack.c.bf16 %v43_v3, %v42_v2  ;;  %v41_v5 = vld [vmem:[#allocation2] sm:$0xff]  ;;  %s139_s12 = sshll.u32 %s254_s1, 4  ;;  %s140_s12 = int_to_ptr.vmem [resolvable:$true] %s139_s12 }
  0x29   :  { %v149_v6 = vld [vmem:[%s323_s2] ss:$0 sm:$0xff]  ;;  %s219_s13 = scalar_lea.vmem %s140_s12, 128  ;;  %p224_p3 = scmp.lt.s32.totalorder %s140_s12, %s140_s12 }
  0x2a   :  { %166 = vmatpush3.bf16.xpose.msk.msra.mxu0 %vm165_vm2, %v164_v4  ;;  %p220_p2 = scmp.ne.s32.totalorder %s140_s12, %s219_s13  ;;  %p225_p4 = scmp.lt.s32.totalorder %s219_s13, %s219_s13 }
  0x2c   :  { %p226_p5 = por %p225_p4, %p224_p3 }
  0x2e   :  { %p227_p6 = pnand %p226_p5, %p220_p2 }
  0x31   :  { %161 = vmatmul.mubr.msk.f32.vlgmr.msra.gmra.mrb[0].mxu0 %vm51_vm1, %v41_v5 }
 0x104   :  { %v127_v7 = vpop.f32.mrb[0].mxu0 }
 0x105   :  { %v128_v8 = vadd.f32 %v149_v6, %v127_v7  ;;  %v162_v9 = vpop.f32.mrb[1].mxu0 }
 0x107   :  { %132 = vst.msk [vmem:[#allocation7] sm:$0xff] %vm131_vm3, %v128_v8 }
 0x108   :  { %230 = shalt.err (!%p227_p6)
}
 0x109   :  { %s231_s16 = scalar_lea.hbm %s324_s3, 128 }
 0x10a   :  { %p232_p7 = scmp.ne.s32.totalorder %s324_s3, %s231_s16  ;;  %p235_p8 = scmp.lt.u32.totalorder %s231_s16, %s324_s3 }
 0x10c   :  { %p237_p9 = pnand %p235_p8, %p232_p7 }
 0x10e   :  { %240 = shalt.err (!%p237_p9)
}
 0x10f   :  { %142 = dma.vmem_to_hbm [thread:$0]  %s140_s12, 128, %s324_s3, [#allocation4]  }
 0x110   :  { %245 = dma.done.wait [#allocation4], 128  }
 0x111   :  { %246 = vsyncadd [#allocation4], 4294967168 }
 0x112   :  { %146 = vsyncpa [#allocation3], 1 }
 0x113   :  { %147 = vsyncpa [#allocation6], 1 }
 0x114   :  { %148 = vsyncpa [#allocation4], 1 }

</bundles_post_ra>
